<compile_context>
chip_gen: v5e
topology: v5e:2x2
jax: 0.10.0
libtpu: 0.0.40
codegen_flags: <defaults>
</compile_context>

<pallas_src>
import functools
import re

import jax
import jax.numpy as jnp
from jax.experimental import pallas as pl
from jax.experimental.pallas import tpu as pltpu


def _round_up(x, m):
    return (x + m - 1) // m * m


def _cdiv(a, b):
    return (a + b - 1) // b


def _tpu_chip_info():
    """Returns (tpu_generation, physical_vmem_bytes, scoped_vmem_default_bytes)."""
    version = 0
    try:
        kind = jax.devices()[0].device_kind      # e.g. "TPU v5 lite", "TPU v6e"
        m = re.search(r"(\d+)", kind)
        if m:
            version = int(m.group(1))
    except Exception:
        pass
    try:
        phys = int(pltpu.get_tpu_info().vmem_capacity_bytes)
    except Exception:
        phys = (64 if version >= 7 else 128) * 1024 * 1024
    scoped = (32 if version >= 6 else 16) * 1024 * 1024
    return version, phys, scoped


def _encoder_resident_kernel(x_ref, w_ref, b_ref, o_ref, *, compute_dtype):
    # x_ref: (tm, Kp) activations (input dtype; cast per-tile to compute dtype)
    # w_ref: (tn, Kp) weight in native nn.Linear [hidden, in] layout. Its block
    #        index is constant across the inner (batch) grid axis, so Pallas
    #        fetches each weight block from HBM exactly once per call.
    # b_ref: (1, tn) f32 bias;  o_ref: (tm, tn) output tile.
    acc = jax.lax.dot_general(
        x_ref[...].astype(compute_dtype), w_ref[...].astype(compute_dtype),
        dimension_numbers=(((1,), (1,)), ((), ())),
        preferred_element_type=jnp.float32)
    o_ref[...] = jnp.tanh(acc + b_ref[...]).astype(o_ref.dtype)


def _encoder_tiled_kernel(x_ref, w_ref, b_ref, o_ref, acc_ref, *, compute_dtype):
    # Fallback path (K tiled): f32 VMEM accumulator, reduction axis last.
    k = pl.program_id(2)

    @pl.when(k == 0)
    def _():
        acc_ref[...] = jnp.zeros_like(acc_ref)

    acc_ref[...] += jax.lax.dot_general(
        x_ref[...].astype(compute_dtype), w_ref[...].astype(compute_dtype),
        dimension_numbers=(((1,), (1,)), ((), ())),
        preferred_element_type=jnp.float32)

    @pl.when(k == pl.num_programs(2) - 1)
    def _():
        o_ref[...] = jnp.tanh(acc_ref[...] + b_ref[...]).astype(o_ref.dtype)


def hidden_state_encoder(x, w, b, *, tm=None, tn=None, tk=None,
                         compute_dtype=None):
    """out = tanh(x @ w.T + b).

    x: [B, inputSize]; w: [hiddenStateSize, inputSize] (nn.Linear layout,
    NOT transposed); b: [hiddenStateSize].
    """
    B, K = x.shape
    N, K_w = w.shape
    assert K == K_w, (x.shape, w.shape)
    assert b.shape == (N,), b.shape

    out_dtype = x.dtype
    version, vmem_phys, vmem_scoped = _tpu_chip_info()
    budget = int(vmem_phys * 0.7)

    # bf16 MXU inputs by default on bf16-native MXU generations (v6e/v7x),
    # keeping f32 accumulation and f32 bias + tanh.  Pass
    # compute_dtype=jnp.float32 to force exact f32 compute.
    if compute_dtype is None:
        compute_dtype = (jnp.bfloat16
                         if (version >= 6 and x.dtype == jnp.float32)
                         else x.dtype)
    compute_dtype = jnp.dtype(compute_dtype)

    xb = jnp.dtype(x.dtype).itemsize
    wb = jnp.dtype(w.dtype).itemsize
    ob = jnp.dtype(out_dtype).itemsize
    sub_m = max(8, 32 // xb)          # dtype-packed sublane quantum for x / out

    Kp = _round_up(K, 128)
    Nlane = _round_up(N, 128)

    # ---- batch tile ----------------------------------------------------------
    if tm is None:
        tm = min(512, _round_up(B, sub_m))
        if version >= 7 and B >= 2 * sub_m:
            # Two TensorCores: want >=2 (prefer 4) balanced tiles on batch axis.
            target = 4 if B >= 4 * 128 else 2
            if B >= target * sub_m:
                tm = min(tm, _round_up(_cdiv(B, target), sub_m))
    Bp = _round_up(B, tm)

    # ---- pick path: weight-resident (K un-tiled) vs K-tiled accumulator ------
    def resident_bytes(tn_):
        return (2 * tm * Kp * xb          # x block (double-buffered)
                + 2 * tn_ * Kp * wb       # w block (fetched once per N tile)
                + 2 * 8 * tn_ * 4         # bias
                + 2 * tm * tn_ * ob)      # output block

    use_resident = (tk is None) or (tk >= Kp)
    tn_res = None
    if use_resident:
        if tn is None:
            cands = []
            for c in (Nlane, 2048, 1024, 512, 256, 128):
                c = min(c, Nlane)
                if c not in cands:
                    cands.append(c)
        else:
            cands = [tn]
        tn_res = next((c for c in cands if resident_bytes(c) <= budget), None)
        use_resident = tn_res is not None

    if use_resident:
        tn = tn_res
        Kpad = Kp
        Npad = _round_up(N, tn)
        grid = (Npad // tn, Bp // tm)                     # batch axis innermost
        vmem_needed = resident_bytes(tn)
        kernel = functools.partial(_encoder_resident_kernel,
                                   compute_dtype=compute_dtype)
        in_specs = [
            pl.BlockSpec((tm, Kpad), lambda j, i: (i, 0)),   # x
            pl.BlockSpec((tn, Kpad), lambda j, i: (j, 0)),   # w: constant over i
            pl.BlockSpec((1, tn), lambda j, i: (0, j)),      # bias
        ]
        out_specs = pl.BlockSpec((tm, tn), lambda j, i: (i, j))
        scratch_shapes = []
        dim_sem = ("parallel", "parallel")
        bytes_accessed = (Bp * Kpad * xb * (Npad // tn)      # x per N tile
                          + Npad * Kpad * wb                 # weight once
                          + Npad * 4 * (Bp // tm)
                          + Bp * Npad * ob)
    else:
        if tn is None:
            tn = min(512, Nlane)
        if tk is None:
            tk = min(2048, Kp)
        tk = min(_round_up(tk, 128), Kp)

        def tiled_bytes(tm_, tn_, tk_):
            return (2 * tm_ * tk_ * xb + 2 * tn_ * tk_ * wb
                    + 2 * 8 * tn_ * 4 + 2 * tm_ * tn_ * ob
                    + tm_ * tn_ * 4)                         # f32 accumulator

        while tiled_bytes(tm, tn, tk) > budget and tk > 512:
            tk = _round_up(tk // 2, 128)

        Kpad = _round_up(K, tk)
        Npad = _round_up(N, tn)
        grid = (Bp // tm, Npad // tn, Kpad // tk)
        vmem_needed = tiled_bytes(tm, tn, tk)
        kernel = functools.partial(_encoder_tiled_kernel,
                                   compute_dtype=compute_dtype)
        in_specs = [
            pl.BlockSpec((tm, tk), lambda i, j, k: (i, k)),  # x
            pl.BlockSpec((tn, tk), lambda i, j, k: (j, k)),  # w
            pl.BlockSpec((1, tn), lambda i, j, k: (0, j)),   # bias
        ]
        out_specs = pl.BlockSpec((tm, tn), lambda i, j, k: (i, j))
        scratch_shapes = [pltpu.VMEM((tm, tn), jnp.float32)]
        dim_sem = ("parallel", "parallel", "arbitrary")
        bytes_accessed = (Bp * Kpad * xb * (Npad // tn)
                          + Npad * Kpad * wb * (Bp // tm)    # weight re-streamed
                          + Npad * 4 * (Bp // tm)
                          + Bp * Npad * ob)

    # ---- zero-pad only when unaligned (exact: K-pad contributes 0, extra rows
    #      / columns are sliced off).  No wrapper-side dtype cast of x / w.
    x_in = x
    w_in = w
    if (Bp, Kpad) != (B, K):
        x_in = jnp.pad(x_in, ((0, Bp - B), (0, Kpad - K)))
    if (Npad, Kpad) != (N, K):
        w_in = jnp.pad(w_in, ((0, Npad - N), (0, Kpad - K)))
    b_in = b.astype(jnp.float32).reshape(1, N)
    if Npad != N:
        b_in = jnp.pad(b_in, ((0, 0), (0, Npad - N)))

    cp_kwargs = dict(dimension_semantics=dim_sem)
    if vmem_needed > int(0.8 * vmem_scoped):
        cp_kwargs["vmem_limit_bytes"] = min(int(vmem_needed * 1.25) + (2 << 20),
                                            int(vmem_phys * 0.9))

    cost = pl.CostEstimate(
        flops=2 * B * K * N,
        transcendentals=B * N,
        bytes_accessed=int(bytes_accessed))

    out = pl.pallas_call(
        kernel,
        out_shape=jax.ShapeDtypeStruct((Bp, Npad), out_dtype),
        grid_spec=pltpu.PrefetchScalarGridSpec(
            num_scalar_prefetch=0,
            grid=grid,
            in_specs=in_specs,
            out_specs=out_specs,
            scratch_shapes=scratch_shapes,
        ),
        compiler_params=pltpu.CompilerParams(**cp_kwargs),
        cost_estimate=cost,
    )(x_in, w_in, b_in)

    if (Bp, Npad) != (B, N):
        out = out[:B, :N]
    return out


if __name__ == "__main__":
    key = jax.random.PRNGKey(0)
    kx, kw, kb = jax.random.split(key, 3)

    # Case 1: small, unaligned shapes like the module's likely config
    # (exercises the zero-padding path; result sliced back to [B, hidden]).
    B1, IN1, HID1 = 8, 32, 32
    x1 = jax.random.normal(kx, (B1, IN1), dtype=jnp.float32)
    w1 = jax.random.normal(kw, (HID1, IN1), dtype=jnp.float32) * 0.1
    b1 = jax.random.normal(kb, (HID1,), dtype=jnp.float32) * 0.1
    ref1 = jnp.tanh(x1 @ w1.T + b1)

    out1 = jax.block_until_ready(hidden_state_encoder(x1, w1, b1))   # chip-aware default
    assert out1.shape == (B1, HID1) and out1.dtype == x1.dtype
    assert jnp.allclose(out1, ref1, atol=5e-2, rtol=5e-2)            # bf16-safe tolerance

    out1_f32 = jax.block_until_ready(
        hidden_state_encoder(x1, w1, b1, compute_dtype=jnp.float32))  # exact f32
    assert jnp.allclose(out1_f32, ref1, atol=1e-5, rtol=1e-5)

    # Case 2: lane-dense shapes (multiples of (8,128)) -> weight-resident path
    # with a single dot + bias + tanh per tile.
    B2, IN2, HID2 = 64, 256, 128
    x2 = jax.random.normal(kx, (B2, IN2), dtype=jnp.float32)
    w2 = jax.random.normal(kw, (HID2, IN2), dtype=jnp.float32) * 0.1
    b2 = jax.random.normal(kb, (HID2,), dtype=jnp.float32) * 0.1
    ref2 = jnp.tanh(x2 @ w2.T + b2)

    out2 = jax.block_until_ready(
        hidden_state_encoder(x2, w2, b2, compute_dtype=jnp.float32))
    assert out2.shape == (B2, HID2)
    assert jnp.allclose(out2, ref2, atol=1e-5, rtol=1e-5)

    out2_auto = jax.block_until_ready(hidden_state_encoder(x2, w2, b2))
    assert jnp.allclose(out2_auto, ref2, atol=5e-2, rtol=5e-2)

    # Multi-tile resident path (2 batch tiles, weight fetched once).
    out3 = jax.block_until_ready(
        hidden_state_encoder(x2, w2, b2, tm=32, compute_dtype=jnp.float32))
    assert jnp.allclose(out3, ref2, atol=1e-5, rtol=1e-5)

    # K-tiled fallback path (accumulator + pl.when init/finalize).
    out4 = jax.block_until_ready(
        hidden_state_encoder(x2, w2, b2, tk=128, compute_dtype=jnp.float32))
    assert jnp.allclose(out4, ref2, atol=1e-5, rtol=1e-5)

    print("KERNEL_OK")
</pallas_src>

<mosaic_0001>
module attributes {stable_mosaic.version = 11 : i64} {
  func.func @_encoder_resident_kernel(%arg0: i32, %arg1: i32, %arg2: memref<8x128xf32, #tpu.memory_space<vmem>>, %arg3: memref<128x128xf32, #tpu.memory_space<vmem>>, %arg4: memref<1x128xf32, #tpu.memory_space<vmem>>, %arg5: memref<8x128xf32, #tpu.memory_space<vmem>>) attributes {dimension_semantics = [#tpu.dimension_semantics<parallel>, #tpu.dimension_semantics<parallel>], iteration_bounds = array<i64: 1, 1>, scalar_prefetch = 0 : i64, scratch_operands = 0 : i64, tpu.core_type = #tpu.core_type<tc>, window_params = [{transform_indices = @transform_0, window_bounds = array<i64: 8, 128>}, {transform_indices = @transform_1, window_bounds = array<i64: 128, 128>}, {transform_indices = @transform_2, window_bounds = array<i64: 1, 128>}, {transform_indices = @transform_3, window_bounds = array<i64: 8, 128>}]} {
    %c0 = arith.constant 0 : index
    %c0_0 = arith.constant 0 : index
    %0 = vector.load %arg2[%c0, %c0_0] : memref<8x128xf32, #tpu.memory_space<vmem>>, vector<8x128xf32>
    %c0_1 = arith.constant 0 : index
    %c0_2 = arith.constant 0 : index
    %1 = vector.load %arg3[%c0_1, %c0_2] : memref<128x128xf32, #tpu.memory_space<vmem>>, vector<128x128xf32>
    %cst = arith.constant dense<0.000000e+00> : vector<8x128xf32>
    %2 = tpu.matmul %0, %1, %cst {dimension_numbers = #tpu.dot_dimension_numbers<[1], [1], [0], [0], [0, 0, 1, 0], [], []>} : vector<8x128xf32>, vector<128x128xf32>, vector<8x128xf32> -> vector<8x128xf32>
    %c0_3 = arith.constant 0 : index
    %c0_4 = arith.constant 0 : index
    %3 = vector.load %arg4[%c0_3, %c0_4] : memref<1x128xf32, #tpu.memory_space<vmem>>, vector<1x128xf32>
    %4 = vector.broadcast %3 : vector<1x128xf32> to vector<8x128xf32>
    %5 = arith.addf %2, %4 : vector<8x128xf32>
    %6 = math.tanh %5 : vector<8x128xf32>
    %c0_5 = arith.constant 0 : index
    %c0_6 = arith.constant 0 : index
    %7 = vector.load %arg5[%c0_5, %c0_6] : memref<8x128xf32, #tpu.memory_space<vmem>>, vector<8x128xf32>
    tpu.vector_store %arg5[%c0_5, %c0_6], %6 {strides = array<i32>} : memref<8x128xf32, #tpu.memory_space<vmem>>, vector<8x128xf32>,
    return
  }
  func.func @transform_0(%arg0: i32, %arg1: i32) -> (i32, i32) {
    %c0_i32 = arith.constant 0 : i32
    %c0_i32_0 = arith.constant 0 : i32
    return %arg1, %c0_i32 : i32, i32
  }
  func.func @transform_1(%arg0: i32, %arg1: i32) -> (i32, i32) {
    %c0_i32 = arith.constant 0 : i32
    %c0_i32_0 = arith.constant 0 : i32
    return %arg0, %c0_i32 : i32, i32
  }
  func.func @transform_2(%arg0: i32, %arg1: i32) -> (i32, i32) {
    %c0_i32 = arith.constant 0 : i32
    %c0_i32_0 = arith.constant 0 : i32
    return %c0_i32, %arg0 : i32, i32
  }
  func.func @transform_3(%arg0: i32, %arg1: i32) -> (i32, i32) {
    %c0_i32 = arith.constant 0 : i32
    return %arg1, %arg0 : i32, i32
  }
}

</mosaic_0001>

<bundles_post_ra>
// kernel: tpu_custom_call.1
= control target key start
LH: loop header
LB: loop body
LE: loop exit
PB: predicated region body
PF: predicated region fallthrough
CT: control target
= control target key end

     0   :  { %8 = vsyncpa [#allocation3], 0  ;;  %s229_s0 = inlined_call_operand.hbm [shape: f32[8,128], index: 0, kind: input, shape index: {}]   ;;  %s230_s1 = inlined_call_operand.hbm [shape: f32[128,128], index: 1, kind: input, shape index: {}]   ;;  %s231_s2 = inlined_call_operand.vmem [shape: f32[1,128], index: 2, kind: input, shape index: {}]   ;;  %s232_s3 = inlined_call_operand.hbm [shape: f32[8,128], index: 3, kind: output, shape index: {}]  }
   0x1   :  { %9 = vsyncpa [#allocation6], 0 }
   0x2   :  { %10 = vsyncpa [#allocation4], 0  ;;  %s16_s14 = sshll.u32 %s229_s0, 4  ;;  %s192_s15 = smov [#allocation2]   ;;  %s17_s14 = int_to_ptr.hbm [resolvable:$true] %s16_s14 }
   0x3   :  { %s18_s16 = sshll.u32 %s192_s15, 4  ;;  %s26_s19 = sshll.u32 %s230_s1, 4  ;;  %s19_s16 = int_to_ptr.vmem [resolvable:$true] %s18_s16  ;;  %s27_s19 = int_to_ptr.hbm [resolvable:$true] %s26_s19 }
   0x4   :  { %21 = dma.hbm_to_vmem [thread:$0]  %s17_s14, 128, %s19_s16, [#allocation3]  }
   0x5   :  { %s193_s20 = smov [#allocation5]   ;;  %s194_s22 = smov 128  }
   0x6   :  { %s28_s21 = sshll.u32 %s193_s20, 4  ;;  %s195_s23 = smov 8   ;;  %s29_s21 = int_to_ptr.vmem [resolvable:$true] %s28_s21 }
   0x7   :  { %34 = dma.hbm_to_vmem [thread:$0]  %s27_s19, 2048, %s29_s21, [#allocation6], %s194_s22, %s194_s22, %s195_s23  }
   0x8   :  { %186 = dma.done.wait [#allocation3], 128  }
   0x9   :  { %187 = vsyncadd [#allocation3], 4294967168 }
   0xa   :  { %188 = dma.done.wait [#allocation6], 2048  }
   0xb   :  { %189 = vsyncadd [#allocation6], 4294965248  ;;  %v61_v0 = vld [vmem:[#allocation5 + $0x78] sm:$0xff]  ;;  %v60_v1 = vld [vmem:[#allocation5 + $0x70] sm:$0xff]  ;;  %s196_s24 = smov [#allocation7]   ;;  %s95_s28 = sshll.u32 %s232_s3, 4  ;;  %s96_s28 = int_to_ptr.hbm [resolvable:$true] %s95_s28 }
   0xc   :  { %66 = vmatpush.xpose.msra.mxu0 %v61_v0  ;;  %v59_v2 = vld [vmem:[#allocation5 + $0x68] sm:$0xff]  ;;  %v58_v3 = vld [vmem:[#allocation5 + $0x60] sm:$0xff]  ;;  %v57_v4 = vld [vmem:[#allocation5 + $0x58] sm:$0xff]  ;;  %s93_s25 = sshll.u32 %s196_s24, 4  ;;  %s94_s25 = int_to_ptr.vmem [resolvable:$true] %s93_s25 }
   0xd   :  { %v56_v5 = vld [vmem:[#allocation5 + $0x50] sm:$0xff]  ;;  %v55_v6 = vld [vmem:[#allocation5 + $0x48] sm:$0xff]  ;;  %v54_v7 = vld [vmem:[#allocation5 + $0x40] sm:$0xff] }
   0xe   :  { %v53_v8 = vld [vmem:[#allocation5 + $0x38] sm:$0xff]  ;;  %v52_v9 = vld [vmem:[#allocation5 + $0x30] sm:$0xff]  ;;  %v51_v10 = vld [vmem:[#allocation5 + $0x28] sm:$0xff] }
   0xf   :  { %v50_v11 = vld [vmem:[#allocation5 + $0x20] sm:$0xff]  ;;  %v49_v12 = vld [vmem:[#allocation5 + $0x18] sm:$0xff]  ;;  %v48_v13 = vld [vmem:[#allocation5 + $0x10] sm:$0xff] }
  0x10   :  { %67 = vmatpush.xpose.msra.mxu0 %v60_v1  ;;  %v47_v14 = vld [vmem:[#allocation5 + $0x8] sm:$0xff]  ;;  %v46_v15 = vld [vmem:[#allocation5] sm:$0xff]  ;;  %v45_v16 = vld [vmem:[#allocation2] sm:$0xff] }
  0x11   :  { %v111_v17 = vld [vmem:[%s231_s2] ss:$0 sm:$0xff] }
  0x14   :  { %68 = vmatpush.xpose.msra.mxu0 %v59_v2 }
  0x18   :  { %69 = vmatpush.xpose.msra.mxu0 %v58_v3 }
  0x1c   :  { %70 = vmatpush.xpose.msra.mxu0 %v57_v4 }
  0x20   :  { %71 = vmatpush.xpose.msra.mxu0 %v56_v5 }
  0x24   :  { %72 = vmatpush.xpose.msra.mxu0 %v55_v6 }
  0x28   :  { %73 = vmatpush.xpose.msra.mxu0 %v54_v7 }
  0x2c   :  { %74 = vmatpush.xpose.msra.mxu0 %v53_v8 }
  0x30   :  { %75 = vmatpush.xpose.msra.mxu0 %v52_v9 }
  0x34   :  { %76 = vmatpush.xpose.msra.mxu0 %v51_v10 }
  0x38   :  { %77 = vmatpush.xpose.msra.mxu0 %v50_v11 }
  0x3c   :  { %78 = vmatpush.xpose.msra.mxu0 %v49_v12 }
  0x40   :  { %79 = vmatpush.xpose.msra.mxu0 %v48_v13 }
  0x44   :  { %80 = vmatpush.xpose.msra.mxu0 %v47_v14 }
  0x48   :  { %81 = vmatpush.xpose.msra.mxu0 %v46_v15 }
  0x4b   :  { %82 = vmatmul.f32.vlgmr.msra.gmra.mxu0 %v45_v16 }
  0xc8   :  { %v83_v18 = vpop.f32.mrf.mxu0 }
  0xc9   :  { %v84_v19 = vadd.f32 %v111_v17, %v83_v18 }
  0xcb   :  { %112 = vtanh.f32 %v84_v19 }
  0xd1   :  { %v113_v20 = vpop.eup %112 }
  0xd2   :  { %87 = vst [vmem:[#allocation7] sm:$0xff] %v113_v20 }
  0xd3   :  { %98 = dma.vmem_to_hbm [thread:$0]  %s94_s25, 128, %s96_s28, [#allocation4]  }
  0xd4   :  { %190 = dma.done.wait [#allocation4], 128  }
  0xd5   :  { %191 = vsyncadd [#allocation4], 4294967168 }
  0xd6   :  { %103 = vsyncpa [#allocation3], 1 }
  0xd7   :  { %104 = vsyncpa [#allocation6], 1 }
  0xd8   :  { %105 = vsyncpa [#allocation4], 1 }

</bundles_post_ra>
